<compile_context>
chip_gen: v6e
topology: v6e:2x2x1
jax: 0.10.0
libtpu: 0.0.40
codegen_flags: <defaults>
</compile_context>

<pallas_src>
import functools

import jax
import jax.numpy as jnp
from jax.experimental import pallas as pl
from jax.experimental.pallas import tpu as pltpu

LANE = 128
SUBLANE = 8


def _round_up(n: int, m: int) -> int:
    return ((n + m - 1) // m) * m


def _cdiv(a: int, b: int) -> int:
    return (a + b - 1) // b


def _vmem_capacity_bytes() -> int:
    """Per-core VMEM capacity (generation-aware), with a conservative fallback."""
    try:
        cap = int(pltpu.get_tpu_info().vmem_capacity_bytes)
        if cap > 0:
            return cap
    except Exception:
        pass
    return 64 * 1024 * 1024  # conservative (v7x per-TC)


def _vmem_estimate(tb: int, th: int, nh: int, d_in: int, d_out: int) -> int:
    """Rough per-core VMEM bytes: weight/bias buffers, double-buffered I/O tiles,
    and in-kernel temporaries (bf16 x copy, f32+bf16 hidden, accumulator)."""
    d_in_l = _round_up(d_in, LANE)
    d_out_l = _round_up(d_out, LANE)
    wbuf = 1 if nh == 1 else 2  # Buffered(1) when weights are resident, else 2
    weights = wbuf * (2 * d_in_l * th + 2 * th * d_out_l + 4 * th + 4 * d_out_l)
    io = 2 * 4 * tb * d_in_l + 2 * 4 * tb * d_out_l          # f32 x + f32 out, double-buffered
    temps = tb * (2 * d_in_l + 6 * th + 8 * d_out_l)         # casts, hidden, acc/z
    return weights + io + temps


def mlp_kernel(x_ref, w1_ref, b1_ref, w2_ref, b2_ref, o_ref, acc_ref):
    # x_ref:(tb, D_in) f32 | w1_ref:(D_in, th) bf16 | b1_ref:(1, th) f32
    # w2_ref:(th, D_out) bf16 | b2_ref:(1, D_out) f32 | o_ref:(tb, D_out) f32
    # acc_ref:(tb, D_out) f32 scratch, carried across the hidden-tile grid axis.
    h_idx = pl.program_id(1)

    @pl.when(h_idx == 0)
    def _init():
        acc_ref[...] = jnp.zeros_like(acc_ref)

    x = x_ref[...].astype(jnp.bfloat16)                                   # f32->bf16 in VMEM (VPU)
    h = jnp.dot(x, w1_ref[...], preferred_element_type=jnp.float32)       # MXU, f32 acc
    h = jnp.maximum(h + b1_ref[...], 0.0)                                 # bias + ReLU (f32, VPU)
    acc_ref[...] += jnp.dot(h.astype(jnp.bfloat16), w2_ref[...],
                            preferred_element_type=jnp.float32)           # MXU, f32 acc

    @pl.when(h_idx == pl.num_programs(1) - 1)
    def _finalize():
        z = acc_ref[...] + b2_ref[...]
        # sigmoid = 1 / (1 + exp(-z)); exp and approx reciprocal both go to the EUP slot.
        o_ref[...] = pl.reciprocal(1.0 + jnp.exp(-z), approx=True).astype(o_ref.dtype)


@functools.partial(jax.jit, static_argnames=("max_block_batch",))
def mlp_forward(x, w1, b1, w2, b2, *, max_block_batch=1024):
    """Fused MLP forward.

    x:  (B, D_in) float   w1: (D_in, H)   b1: (H,) or (1, H)
    w2: (H, D_out)        b2: (D_out,) or (1, D_out)
    Returns (B, D_out) float32 = sigmoid(relu(x @ w1 + b1) @ w2 + b2).
    """
    B, D_in = x.shape
    H = w1.shape[1]
    D_out = w2.shape[1]

    budget = (3 * _vmem_capacity_bytes()) // 4  # ~96 MiB on v5e/v6e, ~48 MiB on v7x

    # ---- hidden-dim tiling: smallest nh whose weight tiles fit the budget ----
    max_nh = max(1, _cdiv(H, LANE))
    nh = 1
    while nh < max_nh and _vmem_estimate(
            SUBLANE, _round_up(_cdiv(H, nh), LANE), nh, D_in, D_out) > budget:
        nh += 1
    th = _round_up(_cdiv(H, nh), LANE)
    H_pad = nh * th

    # ---- batch tiling: largest tile that fits, then split B evenly to avoid a
    # heavily ragged (wasted) last tile ----
    tb_cap = _round_up(min(max_block_batch, _round_up(B, SUBLANE)), SUBLANE)
    while tb_cap > SUBLANE and _vmem_estimate(tb_cap, th, nh, D_in, D_out) > budget:
        tb_cap -= SUBLANE
    tb_cap = max(tb_cap, SUBLANE)
    nb = _cdiv(B, tb_cap)
    if nb == 1:
        tb = B  # full-dim block: always legal, zero padded rows
    else:
        tb = _round_up(_cdiv(B, nb), SUBLANE)
        nb = _cdiv(B, tb)

    # ---- pad/cast only the (small) weights & biases on host; x stays unpadded f32 ----
    w1c = w1.astype(jnp.bfloat16)
    b1c = jnp.asarray(b1, jnp.float32).reshape(1, H)
    w2c = w2.astype(jnp.bfloat16)
    b2c = jnp.asarray(b2, jnp.float32).reshape(1, D_out)
    if H_pad != H:  # zero padding keeps the math exact (relu(0)=0 contributes nothing)
        w1c = jnp.zeros((D_in, H_pad), jnp.bfloat16).at[:, :H].set(w1c)
        b1c = jnp.zeros((1, H_pad), jnp.float32).at[:, :H].set(b1c)
        w2c = jnp.zeros((H_pad, D_out), jnp.bfloat16).at[:H, :].set(w2c)
    xc = x.astype(jnp.float32)

    # Resident weights (nh == 1, constant index_map) only need one pipeline buffer;
    # streamed weight tiles (nh > 1) keep default double-buffering to overlap DMA.
    w_mode = pl.Buffered(1) if nh == 1 else None

    out = pl.pallas_call(
        mlp_kernel,
        out_shape=jax.ShapeDtypeStruct((B, D_out), jnp.float32),
        grid_spec=pltpu.PrefetchScalarGridSpec(
            num_scalar_prefetch=0,
            grid=(nb, nh),
            in_specs=[
                pl.BlockSpec((tb, D_in), lambda i, h: (i, 0)),                       # x: batch-tiled, unpadded
                pl.BlockSpec((D_in, th), lambda i, h: (0, h), pipeline_mode=w_mode),  # w1
                pl.BlockSpec((1, th), lambda i, h: (0, h), pipeline_mode=w_mode),     # b1
                pl.BlockSpec((th, D_out), lambda i, h: (h, 0), pipeline_mode=w_mode), # w2
                pl.BlockSpec((1, D_out), lambda i, h: (0, 0), pipeline_mode=w_mode),  # b2
            ],
            out_specs=pl.BlockSpec((tb, D_out), lambda i, h: (i, 0)),                 # unpadded output
            scratch_shapes=[pltpu.VMEM((tb, D_out), jnp.float32)],                    # f32 accumulator
        ),
        compiler_params=pltpu.CompilerParams(
            dimension_semantics=("parallel", "arbitrary"),  # batch tiles independent, H is a reduction
            vmem_limit_bytes=budget,
        ),
    )(xc, w1c, b1c, w2c, b2c)

    return out


# TODO(synk): BCELoss/Adam training loop, F1/precision/recall metrics, and the
# DataLoader/Dataset plumbing are host-side logic with no kernel equivalent;
# only the forward pass is implemented here.

if __name__ == "__main__":
    # Small shapes consistent with the MLP forward: batch=8, input_dim=32,
    # hidden_dim=32, output_dim=1 (binary classifier with sigmoid output).
    batch, input_dim, hidden_dim, output_dim = 8, 32, 32, 1

    key = jax.random.PRNGKey(0)
    kx, kw1, kb1, kw2, kb2 = jax.random.split(key, 5)

    x = jax.random.normal(kx, (batch, input_dim), dtype=jnp.float32)
    w1 = jax.random.normal(kw1, (input_dim, hidden_dim), dtype=jnp.float32) * 0.1
    b1 = jax.random.normal(kb1, (hidden_dim,), dtype=jnp.float32) * 0.1
    w2 = jax.random.normal(kw2, (hidden_dim, output_dim), dtype=jnp.float32) * 0.1
    b2 = jax.random.normal(kb2, (output_dim,), dtype=jnp.float32) * 0.1

    out = jax.block_until_ready(mlp_forward(x, w1, b1, w2, b2))

    # Reference in plain f32 JAX (same math as the torch forward).
    ref = jax.nn.sigmoid(jnp.maximum(x @ w1 + b1[None, :], 0.0) @ w2 + b2[None, :])
    assert out.shape == (batch, output_dim)
    # Tolerance loosened for bf16 matmul inputs + approx reciprocal (f32 accumulation).
    assert jnp.allclose(out, ref, atol=2e-2, rtol=2e-2), float(jnp.max(jnp.abs(out - ref)))

    print("KERNEL_OK")
</pallas_src>

<mosaic_0001>
module attributes {stable_mosaic.version = 11 : i64} {
  func.func @mlp_kernel(%arg0: i32, %arg1: i32, %arg2: memref<8x32xf32, #tpu.memory_space<vmem>>, %arg3: memref<32x128xbf16, #tpu.memory_space<vmem>>, %arg4: memref<1x128xf32, #tpu.memory_space<vmem>>, %arg5: memref<128x1xbf16, #tpu.memory_space<vmem>>, %arg6: memref<1x1xf32, #tpu.memory_space<vmem>>, %arg7: memref<8x1xf32, #tpu.memory_space<vmem>>, %arg8: memref<8x1xf32, #tpu.memory_space<vmem>>) attributes {dimension_semantics = [#tpu.dimension_semantics<parallel>, #tpu.dimension_semantics<arbitrary>], iteration_bounds = array<i64: 1, 1>, scalar_prefetch = 0 : i64, scratch_operands = 1 : i64, tpu.core_type = #tpu.core_type<tc>, window_params = [{transform_indices = @transform_0, window_bounds = array<i64: 8, 32>}, {pipeline_mode = #tpu.pipeline_mode<synchronous>, transform_indices = @transform_1, window_bounds = array<i64: 32, 128>}, {pipeline_mode = #tpu.pipeline_mode<synchronous>, transform_indices = @transform_2, window_bounds = array<i64: 1, 128>}, {pipeline_mode = #tpu.pipeline_mode<synchronous>, transform_indices = @transform_3, window_bounds = array<i64: 128, 1>}, {pipeline_mode = #tpu.pipeline_mode<synchronous>, transform_indices = @transform_4, window_bounds = array<i64: 1, 1>}, {transform_indices = @transform_5, window_bounds = array<i64: 8, 1>}]} {
    %c0_i32 = arith.constant 0 : i32
    %0 = arith.cmpi eq, %arg1, %c0_i32 : i32
    %1 = arith.extui %0 : i1 to i32
    %c0_i32_0 = arith.constant 0 : i32
    %2 = arith.cmpi ne, %1, %c0_i32_0 : i32
    scf.if %2 {
      %cst_16 = arith.constant 0.000000e+00 : f32
      %21 = vector.broadcast %cst_16 : f32 to vector<8x1xf32>
      %c0_17 = arith.constant 0 : index
      %c0_18 = arith.constant 0 : index
      %22 = vector.load %arg8[%c0_17, %c0_18] : memref<8x1xf32, #tpu.memory_space<vmem>>, vector<8x1xf32>
      tpu.vector_store %arg8[%c0_17, %c0_18], %21 {strides = array<i32>} : memref<8x1xf32, #tpu.memory_space<vmem>>, vector<8x1xf32>,
    } else {
    }
    %c0 = arith.constant 0 : index
    %c0_1 = arith.constant 0 : index
    %3 = vector.load %arg2[%c0, %c0_1] : memref<8x32xf32, #tpu.memory_space<vmem>>, vector<8x32xf32>
    %4 = arith.truncf %3 : vector<8x32xf32> to vector<8x32xbf16>
    %c0_2 = arith.constant 0 : index
    %c0_3 = arith.constant 0 : index
    %5 = vector.load %arg3[%c0_2, %c0_3] : memref<32x128xbf16, #tpu.memory_space<vmem>>, vector<32x128xbf16>
    %cst = arith.constant dense<0.000000e+00> : vector<8x128xf32>
    %6 = tpu.matmul %4, %5, %cst {dimension_numbers = #tpu.dot_dimension_numbers<[1], [0], [0], [1], [0, 0, 1, 1], [], []>} : vector<8x32xbf16>, vector<32x128xbf16>, vector<8x128xf32> -> vector<8x128xf32>
    %c0_4 = arith.constant 0 : index
    %c0_5 = arith.constant 0 : index
    %7 = vector.load %arg4[%c0_4, %c0_5] : memref<1x128xf32, #tpu.memory_space<vmem>>, vector<1x128xf32>
    %8 = vector.broadcast %7 : vector<1x128xf32> to vector<8x128xf32>
    %9 = arith.addf %6, %8 : vector<8x128xf32>
    %cst_6 = arith.constant 0.000000e+00 : f32
    %10 = vector.broadcast %cst_6 : f32 to vector<8x128xf32>
    %11 = arith.maximumf %9, %10 : vector<8x128xf32>
    %c0_7 = arith.constant 0 : index
    %c0_8 = arith.constant 0 : index
    %12 = vector.load %arg8[%c0_7, %c0_8] : memref<8x1xf32, #tpu.memory_space<vmem>>, vector<8x1xf32>
    %13 = arith.truncf %11 : vector<8x128xf32> to vector<8x128xbf16>
    %c0_9 = arith.constant 0 : index
    %c0_10 = arith.constant 0 : index
    %14 = vector.load %arg5[%c0_9, %c0_10] : memref<128x1xbf16, #tpu.memory_space<vmem>>, vector<128x1xbf16>
    %cst_11 = arith.constant dense<0.000000e+00> : vector<8x1xf32>
    %15 = tpu.matmul %13, %14, %cst_11 {dimension_numbers = #tpu.dot_dimension_numbers<[1], [0], [0], [1], [0, 0, 1, 1], [], []>} : vector<8x128xbf16>, vector<128x1xbf16>, vector<8x1xf32> -> vector<8x1xf32>
    %16 = arith.addf %12, %15 : vector<8x1xf32>
    %c0_12 = arith.constant 0 : index
    %c0_13 = arith.constant 0 : index
    %17 = vector.load %arg8[%c0_12, %c0_13] : memref<8x1xf32, #tpu.memory_space<vmem>>, vector<8x1xf32>
    tpu.vector_store %arg8[%c0_12, %c0_13], %16 {strides = array<i32>} : memref<8x1xf32, #tpu.memory_space<vmem>>, vector<8x1xf32>,
    %c0_i32_14 = arith.constant 0 : i32
    %18 = arith.cmpi eq, %arg1, %c0_i32_14 : i32
    %19 = arith.extui %18 : i1 to i32
    %c0_i32_15 = arith.constant 0 : i32
    %20 = arith.cmpi ne, %19, %c0_i32_15 : i32
    scf.if %20 {
      %c0_16 = arith.constant 0 : index
      %c0_17 = arith.constant 0 : index
      %21 = vector.load %arg8[%c0_16, %c0_17] : memref<8x1xf32, #tpu.memory_space<vmem>>, vector<8x1xf32>
      %c0_18 = arith.constant 0 : index
      %c0_19 = arith.constant 0 : index
      %22 = vector.load %arg6[%c0_18, %c0_19] : memref<1x1xf32, #tpu.memory_space<vmem>>, vector<1x1xf32>
      %23 = vector.broadcast %22 : vector<1x1xf32> to vector<8x1xf32>
      %24 = arith.addf %21, %23 : vector<8x1xf32>
      %cst_20 = arith.constant 0.000000e+00 : f32
      %25 = vector.broadcast %cst_20 : f32 to vector<8x1xf32>
      %26 = arith.subf %25, %24 : vector<8x1xf32>
      %27 = math.exp %26 : vector<8x1xf32>
      %cst_21 = arith.constant 1.000000e+00 : f32
      %28 = vector.broadcast %cst_21 : f32 to vector<8x1xf32>
      %29 = arith.addf %28, %27 : vector<8x1xf32>
      %30 = tpu.reciprocal %29 {approx = true} : vector<8x1xf32> -> vector<8x1xf32>
      %c0_22 = arith.constant 0 : index
      %c0_23 = arith.constant 0 : index
      %31 = vector.load %arg7[%c0_22, %c0_23] : memref<8x1xf32, #tpu.memory_space<vmem>>, vector<8x1xf32>
      tpu.vector_store %arg7[%c0_22, %c0_23], %30 {strides = array<i32>} : memref<8x1xf32, #tpu.memory_space<vmem>>, vector<8x1xf32>,
    } else {
    }
    return
  }
  func.func @transform_0(%arg0: i32, %arg1: i32) -> (i32, i32) {
    %c0_i32 = arith.constant 0 : i32
    %c0_i32_0 = arith.constant 0 : i32
    return %arg0, %c0_i32 : i32, i32
  }
  func.func @transform_1(%arg0: i32, %arg1: i32) -> (i32, i32) {
    %c0_i32 = arith.constant 0 : i32
    %c0_i32_0 = arith.constant 0 : i32
    return %c0_i32, %arg1 : i32, i32
  }
  func.func @transform_2(%arg0: i32, %arg1: i32) -> (i32, i32) {
    %c0_i32 = arith.constant 0 : i32
    %c0_i32_0 = arith.constant 0 : i32
    return %c0_i32, %arg1 : i32, i32
  }
  func.func @transform_3(%arg0: i32, %arg1: i32) -> (i32, i32) {
    %c0_i32 = arith.constant 0 : i32
    %c0_i32_0 = arith.constant 0 : i32
    return %arg1, %c0_i32 : i32, i32
  }
  func.func @transform_4(%arg0: i32, %arg1: i32) -> (i32, i32) {
    %c0_i32 = arith.constant 0 : i32
    %c0_i32_0 = arith.constant 0 : i32
    %c0_i32_1 = arith.constant 0 : i32
    return %c0_i32, %c0_i32_0 : i32, i32
  }
  func.func @transform_5(%arg0: i32, %arg1: i32) -> (i32, i32) {
    %c0_i32 = arith.constant 0 : i32
    %c0_i32_0 = arith.constant 0 : i32
    return %arg0, %c0_i32 : i32, i32
  }
}

</mosaic_0001>

<bundles_post_ra>
// kernel: mlp_forward.1
= control target key start
LH: loop header
LB: loop body
LE: loop exit
PB: predicated region body
PF: predicated region fallthrough
CT: control target
= control target key end

     0   :  { %v299_v0 = vmov 0.0   ;;  %vm300_vm0 = vmmov 0   ;;  %vm54_vm1 = vcmask 261120   ;;  %vm27_vm2 = vcmask 7168   ;;  %s376_s1 = inlined_call_operand.vmem [shape: bf16[32,128], index: 1, kind: input, shape index: {}]   ;;  %s377_s0 = inlined_call_operand.vmem [shape: f32[8,32], index: 0, kind: input, shape index: {}]   ;;  %s378_s3 = inlined_call_operand.vmem [shape: bf16[128,1], index: 3, kind: input, shape index: {}]   ;;  %s379_s4 = inlined_call_operand.<no memory space> [shape: f32[1,1], index: 4, kind: input, shape index: {}]   ;;  %s380_s2 = inlined_call_operand.vmem [shape: f32[1,128], index: 2, kind: input, shape index: {}]   ;;  %s381_s5 = inlined_call_operand.vmem [shape: f32[8,1], index: 5, kind: output, shape index: {}]  }
   0x1   :  { %255 = vmatprep.subr.bf16.mxu0 %v299_v0  ;;  %v285_v1 = vld [vmem:[%s376_s1 + $0x8] sm:$0xff]   ;;  %259 = vmatprep.mubr.msk.bf16.mxu0 %vm300_vm0, %v299_v0  ;;  %v286_v2 = vld [vmem:[%s376_s1] sm:$0xff]   ;;  %v287_v4 = vld [vmem:[%s378_s3 + $0x38] sm:$0xff]   ;;  %v10_v13 = vstv %s379_s4  ;;  %28 = vst.msk [vmem:[#allocation2] sm:$0xff] %vm27_vm2, %v299_v0 }
   0x2   :  { %263 = vmatprep.subr.bf16.mxu1 %v299_v0  ;;  %279 = vmatprep.mubr.msk.bf16.mxu1 %vm300_vm0, %v299_v0  ;;  %v29_v3 = vld [vmem:[%s377_s0] sm:$0xff]  ;;  %v288_v6 = vld [vmem:[%s378_s3 + $0x30] sm:$0xff]   ;;  %v289_v7 = vld [vmem:[%s378_s3 + $0x28] sm:$0xff]   ;;  %11 = vst [vmem:[#allocation3] sm:$0x1] %v10_v13 }
   0x3   :  { %256 = vmatpush3.bf16.msra.mxu0 %v285_v1  ;;  %v30_v5 = vpack.c.bf16 %v29_v3, %v29_v3  ;;  %264 = vmatpush3.bf16.msra.mxu1 %v287_v4  ;;  %v290_v8 = vld [vmem:[%s378_s3 + $0x20] sm:$0xff]   ;;  %v291_v9 = vld [vmem:[%s378_s3 + $0x18] sm:$0xff]   ;;  %v292_v10 = vld [vmem:[%s378_s3 + $0x10] sm:$0xff]  }
   0x4   :  { %257 = vmatprep.subr.bf16.mxu0 %v299_v0  ;;  %265 = vmatprep.subr.bf16.mxu1 %v299_v0  ;;  %v293_v11 = vld [vmem:[%s378_s3 + $0x8] sm:$0xff]   ;;  %v294_v12 = vld [vmem:[%s378_s3] sm:$0xff]  }
   0x5   :  { %v230_v14 = vld [vmem:[%s380_s2] ss:$0 sm:$0xff] }
   0x7   :  { %258 = vmatpush3.bf16.msra.mxu0 %v286_v2  ;;  %266 = vmatpush3.bf16.msra.mxu1 %v288_v6 }
   0x8   :  { %267 = vmatprep.subr.bf16.mxu1 %v299_v0  ;;  %v99_v22 = vld [vmem:[#allocation2] sm:$0xff] }
   0x9   :  { %v242_v28 = vld [vmem:[#allocation3] ss:$0 sm:$0xff] }
   0xa   :  { %260 = vmatmul.mubr.msk.bf16.vlgmr.msra.gmra.mxu0 %vm54_vm1, %v30_v5 }
   0xb   :  { %268 = vmatpush3.bf16.msra.mxu1 %v289_v7 }
   0xc   :  { %269 = vmatprep.subr.bf16.mxu1 %v299_v0 }
   0xf   :  { %270 = vmatpush3.bf16.msra.mxu1 %v290_v8 }
  0x10   :  { %271 = vmatprep.subr.bf16.mxu1 %v299_v0 }
  0x13   :  { %272 = vmatpush3.bf16.msra.mxu1 %v291_v9 }
  0x14   :  { %273 = vmatprep.subr.bf16.mxu1 %v299_v0 }
  0x17   :  { %274 = vmatpush3.bf16.msra.mxu1 %v292_v10 }
  0x18   :  { %275 = vmatprep.subr.bf16.mxu1 %v299_v0 }
  0x1b   :  { %276 = vmatpush3.bf16.msra.mxu1 %v293_v11 }
  0x1c   :  { %277 = vmatprep.subr.bf16.mxu1 %v299_v0 }
  0x1f   :  { %278 = vmatpush3.bf16.msra.mxu1 %v294_v12 }
  0xca   :  { %v92_v15 = vpop.f32.mrf.mxu0 }
  0xcb   :  { %v93_v16 = vadd.f32 %v230_v14, %v92_v15 }
  0xcc   :  { %v261_v17 = vpop.f32.mrf.mxu0 }
  0xcd   :  { %v98_v18 = vmax.f32 %v93_v16, 0.0 }
  0xce   :  { %v95_v19 = vpop.f32.mrf.mxu0 }
  0xcf   :  { %v100_v20 = vpack.c.bf16 %v98_v18, %v98_v18 }
  0xd0   :  { %v262_v21 = vpop.f32.mrf.mxu0 }
  0xd1   :  { %280 = vmatmul.mubr.bf16.vlgmr.msra.gmra.mxu1 %v100_v20 }
 0x191   :  { %v199_v23 = vpop.f32.mrf.mxu1 }
 0x192   :  { %v205_v24 = vadd.f32 %v199_v23, %v99_v22 }
 0x193   :  { %v281_v25 = vpop.f32.mrf.mxu1 }
 0x194   :  { %207 = vst.msk [vmem:[#allocation2] sm:$0xff] %vm27_vm2, %v205_v24 }
 0x195   :  { %v202_v26 = vpop.f32.mrf.mxu1 }
 0x197   :  { %v282_v27 = vpop.f32.mrf.mxu1 }
 0x19b   :  { %v211_v29 = vld [vmem:[#allocation2] sm:$0xff] }
 0x19c   :  { %v219_v30 = vadd.f32 %v242_v28, %v211_v29 }
 0x19e   :  { %v220_v31 = vsub.f32 0.0, %v219_v30 }
 0x1a0   :  { %v221_v32 = vmul.f32 1.442695, %v220_v31 }
 0x1a2   :  { %295 = vpow2.f32 %v221_v32 }
 0x1af   :  { %v296_v33 = vpop.eup %295 }
 0x1b0   :  { %v223_v34 = vadd.f32 1.0, %v296_v33 }
 0x1b2   :  { %297 = vrcp.f32 %v223_v34 }
 0x1bf   :  { %v298_v35 = vpop.eup %297 }
 0x1c0   :  { %225 = vst.msk [vmem:[%s381_s5] sm:$0xff] %vm27_vm2, %v298_v35 }

</bundles_post_ra>
